<compile_context>
chip_gen: v7x
topology: tpu7x:2x2x1
jax: 0.10.0
libtpu: 0.0.40
codegen_flags: <defaults>
</compile_context>

<pallas_src>
import jax
import jax.numpy as jnp
from jax.experimental import pallas as pl
from jax.experimental.pallas import tpu as pltpu


def _cdiv(a, b):
    return (a + b - 1) // b


def _round_up(a, b):
    return _cdiv(a, b) * b


# ----------------------------------------------------------------------------
# Fused Pallas kernel: all decoder layers + LayerNorm + projection
# ----------------------------------------------------------------------------
def _decoder_stack_kernel(x_ref, cross_ref, trend_ref,
                          w_sc_ref, b_ref, w_out_ref, w_trend_ref,
                          gamma_ref, beta_ref, w_proj_ref, b_proj_ref,
                          out_ref, trend_out_ref,
                          x_acc_ref):
    """For one (TM, D) row tile:
         for l in layers:
           y      = gelu([x | cross] @ [[W_self[l]],[W_cross[l]]] + b[l])
           x      = x + y @ W_out[l]                 (residual)
           trend  = trend + x @ W_trend[l]           (trend accumulation)
         out      = (LayerNorm(x) * gamma + beta) @ W_proj + b_proj
    x is carried in a VMEM scratch ref, trend directly in the output block
    (bounds live ranges across the statically unrolled layer loop).
    """
    f32 = jnp.float32
    mm_dtype = w_sc_ref.dtype                     # bf16 MXU inputs

    cross_mm = cross_ref[...]                     # (TM, D) bf16, reused every layer
    x_acc_ref[...] = x_ref[...].astype(f32)       # f32 residual carry
    trend_out_ref[...] = trend_ref[...]           # f32 trend accumulator (output block)

    num_layers = w_sc_ref.shape[0]
    for l in range(num_layers):                   # static unroll; static weight index
        x = x_acc_ref[...]
        # fused self/cross contraction: K = 2*D, single MXU push
        xc = jnp.concatenate([x.astype(mm_dtype), cross_mm], axis=-1)
        y = jnp.dot(xc, w_sc_ref[l], preferred_element_type=f32) + b_ref[l]
        y = jax.nn.gelu(y, approximate=True)
        x = x + jnp.dot(y.astype(mm_dtype), w_out_ref[l],
                        preferred_element_type=f32)
        x_acc_ref[...] = x
        trend_out_ref[...] += jnp.dot(x.astype(mm_dtype), w_trend_ref[l],
                                      preferred_element_type=f32)

    # LayerNorm over d_model (f32)
    x = x_acc_ref[...]
    mean = jnp.mean(x, axis=-1, keepdims=True)
    xm = x - mean
    var = jnp.mean(xm * xm, axis=-1, keepdims=True)
    xn = xm * jax.lax.rsqrt(var + 1e-5)
    xn = xn * gamma_ref[...] + beta_ref[...]

    # Projection d_model -> c_out
    out = jnp.dot(xn.astype(mm_dtype), w_proj_ref[...],
                  preferred_element_type=f32) + b_proj_ref[...]
    out_ref[...] = out.astype(out_ref.dtype)


# ----------------------------------------------------------------------------
# Wrapper
# ----------------------------------------------------------------------------
_ROW_ALIGN = 16   # sublane tile for bf16 row blocks (also covers f32's 8)


def _choose_row_tile(M, D, row_tile=None):
    if row_tile is None:
        # Narrow D: big row tiles amortize the ~0.35us per-grid-step overhead.
        row_tile = 4096 if D <= 128 else 1024
    row_tile = _round_up(row_tile, _ROW_ALIGN)
    if M <= _ROW_ALIGN:
        return _ROW_ALIGN
    if M <= row_tile:
        # aim for >= 2 grid steps so both v7x TensorCores get work
        return _round_up(_cdiv(M, 2), _ROW_ALIGN)
    steps = _cdiv(M, row_tile)
    return _round_up(_cdiv(M, steps), _ROW_ALIGN)


def decoder_forward(x, cross, trend, params, *, row_tile=None):
    """Mirrors Decoder.forward:
         for layer in layers: x, residual_trend = layer(x, cross); trend += residual_trend
         x = norm(x); x = projection(x)
         return x, trend
    """
    B, L, D = x.shape
    C = trend.shape[-1]
    M = B * L
    num_layers = params["w_self"].shape[0]
    bf16, f32 = jnp.bfloat16, jnp.float32

    TM = _choose_row_tile(M, D, row_tile)
    grid = (_cdiv(M, TM),)
    M_pad = grid[0] * TM

    def pad_rows(a):
        return jnp.pad(a, ((0, M_pad - M), (0, 0))) if M_pad != M else a

    # bf16 activations halve the row-tile DMA bytes; f32 accumulation in-kernel.
    x2d = pad_rows(x.reshape(M, D)).astype(bf16)
    cross2d = pad_rows(cross.reshape(M, D)).astype(bf16)
    trend2d = pad_rows(trend.reshape(M, C)).astype(f32)

    # Fused self/cross weight stack: [x | cross] @ [[W_self],[W_cross]]
    w_sc = jnp.concatenate([params["w_self"], params["w_cross"]], axis=1).astype(bf16)
    w_out = params["w_out"].astype(bf16)
    w_trend = params["w_trend"].astype(bf16)
    w_proj = params["w_proj"].astype(bf16)
    b = params["b"].astype(f32)
    gamma = params["gamma"].astype(f32)
    beta = params["beta"].astype(f32)
    b_proj = params["b_proj"].astype(f32)

    resident_arrays = (w_sc, b, w_out, w_trend, gamma, beta, w_proj, b_proj)
    weight_bytes = sum(int(a.size) * a.dtype.itemsize for a in resident_arrays)
    tile_bytes = (2 * TM * D * 2        # x, cross bf16 row tiles
                  + TM * C * 4          # trend in tile (f32)
                  + 2 * TM * C * 4      # out + trend_out tiles (f32)
                  + TM * D * 4)         # x accumulator scratch (f32)
    # resident weights (single copy) + double-buffered row tiles + headroom,
    # capped below v7x's 64 MiB/TC physical VMEM (with small safety for layouts)
    vmem_limit = int(min(weight_bytes + 2 * tile_bytes + (8 << 20), 96 << 20))

    flops = 2 * M_pad * num_layers * (2 * D * D + D * D + D * C) + 2 * M_pad * D * C
    bytes_accessed = (x2d.size * 2 + cross2d.size * 2 + trend2d.size * 4
                      + 2 * M_pad * C * 4 + weight_bytes)

    def row_spec(width):
        return pl.BlockSpec((TM, width), lambda i: (i, 0))

    # Whole-array VMEM residency: fetched once per call, no per-step double buffer.
    resident = pl.BlockSpec(memory_space=pltpu.MemorySpace.VMEM)

    out2d, trend_out2d = pl.pallas_call(
        _decoder_stack_kernel,
        grid=grid,
        in_specs=[row_spec(D),          # x tile (bf16)
                  row_spec(D),          # cross tile (bf16)
                  row_spec(C)]          # trend tile (f32, aliased to output 1)
                 + [resident] * 8,      # stacked weights / biases / norm / proj
        out_specs=(row_spec(C), row_spec(C)),
        out_shape=(jax.ShapeDtypeStruct((M_pad, C), f32),
                   jax.ShapeDtypeStruct((M_pad, C), f32)),
        scratch_shapes=[pltpu.VMEM((TM, D), f32)],   # x residual carry
        input_output_aliases={2: 1},    # trend accumulates in place (no extra HBM buf)
        compiler_params=pltpu.CompilerParams(
            dimension_semantics=("parallel",),
            vmem_limit_bytes=vmem_limit),
        cost_estimate=pl.CostEstimate(
            flops=int(flops),
            transcendentals=int(M_pad * D * num_layers + M_pad),
            bytes_accessed=int(bytes_accessed)),
    )(x2d, cross2d, trend2d,
      w_sc, b, w_out, w_trend, gamma, beta, w_proj, b_proj)

    out = out2d[:M].reshape(B, L, C)
    trend_out = trend_out2d[:M].reshape(B, L, C)
    return out, trend_out


# ----------------------------------------------------------------------------
# Pure-JAX reference (mirrors the kernel's bf16 storage / f32 accumulation)
# ----------------------------------------------------------------------------
def _ref_forward(x, cross, trend, params):
    f32 = jnp.float32
    q = lambda a: a.astype(jnp.bfloat16).astype(f32)   # simulate bf16 storage
    x = q(x)
    cross = q(cross)
    trend = trend.astype(f32)
    num_layers = params["w_self"].shape[0]
    for l in range(num_layers):
        y = (q(x) @ q(params["w_self"][l]) + cross @ q(params["w_cross"][l])
             + params["b"][l])
        y = jax.nn.gelu(y, approximate=True)
        x = x + q(y) @ q(params["w_out"][l])
        trend = trend + q(x) @ q(params["w_trend"][l])
    mean = jnp.mean(x, axis=-1, keepdims=True)
    var = jnp.mean((x - mean) ** 2, axis=-1, keepdims=True)
    xn = (x - mean) * jax.lax.rsqrt(var + 1e-5)
    xn = xn * params["gamma"] + params["beta"]
    out = q(xn) @ q(params["w_proj"]) + params["b_proj"]
    return out, trend


# ----------------------------------------------------------------------------
# Deterministic parameter init + run
# ----------------------------------------------------------------------------
def _make_params(key, num_layers, d_model, c_out):
    ks = jax.random.split(key, 8)

    def w(k, shape, fan_in):
        return jax.random.normal(k, shape, jnp.float32) / jnp.sqrt(fan_in)

    return {
        "w_self":  w(ks[0], (num_layers, d_model, d_model), d_model),
        "w_cross": w(ks[1], (num_layers, d_model, d_model), d_model),
        "b":       0.1 * jax.random.normal(ks[2], (num_layers, 1, d_model), jnp.float32),
        "w_out":   w(ks[3], (num_layers, d_model, d_model), d_model),
        "w_trend": w(ks[4], (num_layers, d_model, c_out), d_model),
        "gamma":   jnp.ones((1, d_model), jnp.float32),
        "beta":    jnp.zeros((1, d_model), jnp.float32),
        "w_proj":  w(ks[5], (d_model, c_out), d_model),
        "b_proj":  0.1 * jax.random.normal(ks[6], (1, c_out), jnp.float32),
    }


if __name__ == "__main__":
    B, L, D, C = 2, 16, 32, 8
    num_layers = 2

    key = jax.random.PRNGKey(0)
    kx, kc, kt, kp = jax.random.split(key, 4)
    x = jax.random.normal(kx, (B, L, D), jnp.float32)
    cross = jax.random.normal(kc, (B, L, D), jnp.float32)
    trend = jax.random.normal(kt, (B, L, C), jnp.float32)

    params = _make_params(kp, num_layers, D, C)

    out, trend_out = decoder_forward(x, cross, trend, params)
    out, trend_out = jax.block_until_ready((out, trend_out))

    ref_out, ref_trend = _ref_forward(x, cross, trend, params)
    assert jnp.allclose(out, ref_out, atol=2e-3, rtol=2e-3), \
        f"out mismatch: {jnp.max(jnp.abs(out - ref_out))}"
    assert jnp.allclose(trend_out, ref_trend, atol=2e-3, rtol=2e-3), \
        f"trend mismatch: {jnp.max(jnp.abs(trend_out - ref_trend))}"

    print("KERNEL_OK")
</pallas_src>

<mosaic_0001>
module attributes {stable_mosaic.version = 11 : i64} {
  func.func @_decoder_stack_kernel(%arg0: i32, %arg1: memref<16x32xbf16, #tpu.memory_space<vmem>>, %arg2: memref<16x32xbf16, #tpu.memory_space<vmem>>, %arg3: memref<16x8xf32, #tpu.memory_space<vmem>>, %arg4: memref<2x64x32xbf16, #tpu.memory_space<vmem>>, %arg5: memref<2x1x32xf32, #tpu.memory_space<vmem>>, %arg6: memref<2x32x32xbf16, #tpu.memory_space<vmem>>, %arg7: memref<2x32x8xbf16, #tpu.memory_space<vmem>>, %arg8: memref<1x32xf32, #tpu.memory_space<vmem>>, %arg9: memref<1x32xf32, #tpu.memory_space<vmem>>, %arg10: memref<32x8xbf16, #tpu.memory_space<vmem>>, %arg11: memref<1x8xf32, #tpu.memory_space<vmem>>, %arg12: memref<16x8xf32, #tpu.memory_space<vmem>>, %arg13: memref<16x8xf32, #tpu.memory_space<vmem>>, %arg14: memref<16x32xf32, #tpu.memory_space<vmem>>) attributes {dimension_semantics = [#tpu.dimension_semantics<parallel>], iteration_bounds = array<i64: 2>, scalar_prefetch = 0 : i64, scratch_operands = 1 : i64, tpu.core_type = #tpu.core_type<tc>, window_params = [{transform_indices = @transform_0, window_bounds = array<i64: 16, 32>}, {transform_indices = @transform_1, window_bounds = array<i64: 16, 32>}, {transform_indices = @transform_2, window_bounds = array<i64: 16, 8>}, {pipeline_mode = #tpu.pipeline_mode<synchronous>, transform_indices = @transform_3, window_bounds = array<i64: 2, 64, 32>}, {pipeline_mode = #tpu.pipeline_mode<synchronous>, transform_indices = @transform_4, window_bounds = array<i64: 2, 1, 32>}, {pipeline_mode = #tpu.pipeline_mode<synchronous>, transform_indices = @transform_5, window_bounds = array<i64: 2, 32, 32>}, {pipeline_mode = #tpu.pipeline_mode<synchronous>, transform_indices = @transform_6, window_bounds = array<i64: 2, 32, 8>}, {pipeline_mode = #tpu.pipeline_mode<synchronous>, transform_indices = @transform_7, window_bounds = array<i64: 1, 32>}, {pipeline_mode = #tpu.pipeline_mode<synchronous>, transform_indices = @transform_8, window_bounds = array<i64: 1, 32>}, {pipeline_mode = #tpu.pipeline_mode<synchronous>, transform_indices = @transform_9, window_bounds = array<i64: 32, 8>}, {pipeline_mode = #tpu.pipeline_mode<synchronous>, transform_indices = @transform_10, window_bounds = array<i64: 1, 8>}, {transform_indices = @transform_11, window_bounds = array<i64: 16, 8>}, {transform_indices = @transform_12, window_bounds = array<i64: 16, 8>}]} {
    %c0 = arith.constant 0 : index
    %c0_0 = arith.constant 0 : index
    %0 = vector.load %arg2[%c0, %c0_0] : memref<16x32xbf16, #tpu.memory_space<vmem>>, vector<16x32xbf16>
    %c0_1 = arith.constant 0 : index
    %c0_2 = arith.constant 0 : index
    %1 = vector.load %arg1[%c0_1, %c0_2] : memref<16x32xbf16, #tpu.memory_space<vmem>>, vector<16x32xbf16>
    %2 = arith.extf %1 : vector<16x32xbf16> to vector<16x32xf32>
    %c0_3 = arith.constant 0 : index
    %c0_4 = arith.constant 0 : index
    %3 = vector.load %arg14[%c0_3, %c0_4] : memref<16x32xf32, #tpu.memory_space<vmem>>, vector<16x32xf32>
    tpu.vector_store %arg14[%c0_3, %c0_4], %2 {strides = array<i32>} : memref<16x32xf32, #tpu.memory_space<vmem>>, vector<16x32xf32>,
    %c0_5 = arith.constant 0 : index
    %c0_6 = arith.constant 0 : index
    %4 = vector.load %arg3[%c0_5, %c0_6] : memref<16x8xf32, #tpu.memory_space<vmem>>, vector<16x8xf32>
    %c0_7 = arith.constant 0 : index
    %c0_8 = arith.constant 0 : index
    %5 = vector.load %arg13[%c0_7, %c0_8] : memref<16x8xf32, #tpu.memory_space<vmem>>, vector<16x8xf32>
    tpu.vector_store %arg13[%c0_7, %c0_8], %4 {strides = array<i32>} : memref<16x8xf32, #tpu.memory_space<vmem>>, vector<16x8xf32>,
    %c0_9 = arith.constant 0 : index
    %c0_10 = arith.constant 0 : index
    %6 = vector.load %arg14[%c0_9, %c0_10] : memref<16x32xf32, #tpu.memory_space<vmem>>, vector<16x32xf32>
    %7 = arith.truncf %6 : vector<16x32xf32> to vector<16x32xbf16>
    %8 = tpu.concatenate %7, %0 in 1 : vector<16x32xbf16>, vector<16x32xbf16> -> vector<16x64xbf16>
    %c0_11 = arith.constant 0 : index
    %c0_12 = arith.constant 0 : index
    %c0_13 = arith.constant 0 : index
    %9 = vector.load %arg4[%c0_11, %c0_12, %c0_13] : memref<2x64x32xbf16, #tpu.memory_space<vmem>>, vector<1x64x32xbf16>
    %10 = vector.shape_cast %9 : vector<1x64x32xbf16> to vector<64x32xbf16>
    %cst = arith.constant dense<0.000000e+00> : vector<16x32xf32>
    %11 = tpu.matmul %8, %10, %cst {dimension_numbers = #tpu.dot_dimension_numbers<[1], [0], [0], [1], [0, 0, 1, 1], [], []>} : vector<16x64xbf16>, vector<64x32xbf16>, vector<16x32xf32> -> vector<16x32xf32>
    %c0_14 = arith.constant 0 : index
    %c0_15 = arith.constant 0 : index
    %c0_16 = arith.constant 0 : index
    %12 = vector.load %arg5[%c0_14, %c0_15, %c0_16] : memref<2x1x32xf32, #tpu.memory_space<vmem>>, vector<1x1x32xf32>
    %13 = vector.shape_cast %12 : vector<1x1x32xf32> to vector<1x32xf32>
    %14 = vector.broadcast %13 : vector<1x32xf32> to vector<16x32xf32>
    %15 = arith.addf %11, %14 : vector<16x32xf32>
    %16 = arith.mulf %15, %15 : vector<16x32xf32>
    %17 = arith.mulf %15, %16 : vector<16x32xf32>
    %cst_17 = arith.constant 4.471500e-02 : f32
    %18 = vector.broadcast %cst_17 : f32 to vector<16x32xf32>
    %19 = arith.mulf %18, %17 : vector<16x32xf32>
    %20 = arith.addf %15, %19 : vector<16x32xf32>
    %cst_18 = arith.constant 0.797884583 : f32
    %21 = vector.broadcast %cst_18 : f32 to vector<16x32xf32>
    %22 = arith.mulf %21, %20 : vector<16x32xf32>
    %23 = math.tanh %22 : vector<16x32xf32>
    %cst_19 = arith.constant 1.000000e+00 : f32
    %24 = vector.broadcast %cst_19 : f32 to vector<16x32xf32>
    %25 = arith.addf %24, %23 : vector<16x32xf32>
    %cst_20 = arith.constant 5.000000e-01 : f32
    %26 = vector.broadcast %cst_20 : f32 to vector<16x32xf32>
    %27 = arith.mulf %26, %25 : vector<16x32xf32>
    %28 = arith.mulf %15, %27 : vector<16x32xf32>
    %29 = arith.truncf %28 : vector<16x32xf32> to vector<16x32xbf16>
    %c0_21 = arith.constant 0 : index
    %c0_22 = arith.constant 0 : index
    %c0_23 = arith.constant 0 : index
    %30 = vector.load %arg6[%c0_21, %c0_22, %c0_23] : memref<2x32x32xbf16, #tpu.memory_space<vmem>>, vector<1x32x32xbf16>
    %31 = vector.shape_cast %30 : vector<1x32x32xbf16> to vector<32x32xbf16>
    %cst_24 = arith.constant dense<0.000000e+00> : vector<16x32xf32>
    %32 = tpu.matmul %29, %31, %cst_24 {dimension_numbers = #tpu.dot_dimension_numbers<[1], [0], [0], [1], [0, 0, 1, 1], [], []>} : vector<16x32xbf16>, vector<32x32xbf16>, vector<16x32xf32> -> vector<16x32xf32>
    %33 = arith.addf %6, %32 : vector<16x32xf32>
    %c0_25 = arith.constant 0 : index
    %c0_26 = arith.constant 0 : index
    %34 = vector.load %arg14[%c0_25, %c0_26] : memref<16x32xf32, #tpu.memory_space<vmem>>, vector<16x32xf32>
    tpu.vector_store %arg14[%c0_25, %c0_26], %33 {strides = array<i32>} : memref<16x32xf32, #tpu.memory_space<vmem>>, vector<16x32xf32>,
    %c0_27 = arith.constant 0 : index
    %c0_28 = arith.constant 0 : index
    %35 = vector.load %arg13[%c0_27, %c0_28] : memref<16x8xf32, #tpu.memory_space<vmem>>, vector<16x8xf32>
    %36 = arith.truncf %33 : vector<16x32xf32> to vector<16x32xbf16>
    %c0_29 = arith.constant 0 : index
    %c0_30 = arith.constant 0 : index
    %c0_31 = arith.constant 0 : index
    %37 = vector.load %arg7[%c0_29, %c0_30, %c0_31] : memref<2x32x8xbf16, #tpu.memory_space<vmem>>, vector<1x32x8xbf16>
    %38 = vector.shape_cast %37 : vector<1x32x8xbf16> to vector<32x8xbf16>
    %cst_32 = arith.constant dense<0.000000e+00> : vector<16x8xf32>
    %39 = tpu.matmul %36, %38, %cst_32 {dimension_numbers = #tpu.dot_dimension_numbers<[1], [0], [0], [1], [0, 0, 1, 1], [], []>} : vector<16x32xbf16>, vector<32x8xbf16>, vector<16x8xf32> -> vector<16x8xf32>
    %40 = arith.addf %35, %39 : vector<16x8xf32>
    %c0_33 = arith.constant 0 : index
    %c0_34 = arith.constant 0 : index
    %41 = vector.load %arg13[%c0_33, %c0_34] : memref<16x8xf32, #tpu.memory_space<vmem>>, vector<16x8xf32>
    tpu.vector_store %arg13[%c0_33, %c0_34], %40 {strides = array<i32>} : memref<16x8xf32, #tpu.memory_space<vmem>>, vector<16x8xf32>,
    %c0_35 = arith.constant 0 : index
    %c0_36 = arith.constant 0 : index
    %42 = vector.load %arg14[%c0_35, %c0_36] : memref<16x32xf32, #tpu.memory_space<vmem>>, vector<16x32xf32>
    %43 = arith.truncf %42 : vector<16x32xf32> to vector<16x32xbf16>
    %44 = tpu.concatenate %43, %0 in 1 : vector<16x32xbf16>, vector<16x32xbf16> -> vector<16x64xbf16>
    %c1 = arith.constant 1 : index
    %c0_37 = arith.constant 0 : index
    %c0_38 = arith.constant 0 : index
    %45 = vector.load %arg4[%c1, %c0_37, %c0_38] : memref<2x64x32xbf16, #tpu.memory_space<vmem>>, vector<1x64x32xbf16>
    %46 = vector.shape_cast %45 : vector<1x64x32xbf16> to vector<64x32xbf16>
    %cst_39 = arith.constant dense<0.000000e+00> : vector<16x32xf32>
    %47 = tpu.matmul %44, %46, %cst_39 {dimension_numbers = #tpu.dot_dimension_numbers<[1], [0], [0], [1], [0, 0, 1, 1], [], []>} : vector<16x64xbf16>, vector<64x32xbf16>, vector<16x32xf32> -> vector<16x32xf32>
    %c1_40 = arith.constant 1 : index
    %c0_41 = arith.constant 0 : index
    %c0_42 = arith.constant 0 : index
    %48 = vector.load %arg5[%c1_40, %c0_41, %c0_42] : memref<2x1x32xf32, #tpu.memory_space<vmem>>, vector<1x1x32xf32>
    %49 = vector.shape_cast %48 : vector<1x1x32xf32> to vector<1x32xf32>
    %50 = vector.broadcast %49 : vector<1x32xf32> to vector<16x32xf32>
    %51 = arith.addf %47, %50 : vector<16x32xf32>
    %52 = arith.mulf %51, %51 : vector<16x32xf32>
    %53 = arith.mulf %51, %52 : vector<16x32xf32>
    %cst_43 = arith.constant 4.471500e-02 : f32
    %54 = vector.broadcast %cst_43 : f32 to vector<16x32xf32>
    %55 = arith.mulf %54, %53 : vector<16x32xf32>
    %56 = arith.addf %51, %55 : vector<16x32xf32>
    %cst_44 = arith.constant 0.797884583 : f32
    %57 = vector.broadcast %cst_44 : f32 to vector<16x32xf32>
    %58 = arith.mulf %57, %56 : vector<16x32xf32>
    %59 = math.tanh %58 : vector<16x32xf32>
    %cst_45 = arith.constant 1.000000e+00 : f32
    %60 = vector.broadcast %cst_45 : f32 to vector<16x32xf32>
    %61 = arith.addf %60, %59 : vector<16x32xf32>
    %cst_46 = arith.constant 5.000000e-01 : f32
    %62 = vector.broadcast %cst_46 : f32 to vector<16x32xf32>
    %63 = arith.mulf %62, %61 : vector<16x32xf32>
    %64 = arith.mulf %51, %63 : vector<16x32xf32>
    %65 = arith.truncf %64 : vector<16x32xf32> to vector<16x32xbf16>
    %c1_47 = arith.constant 1 : index
    %c0_48 = arith.constant 0 : index
    %c0_49 = arith.constant 0 : index
    %66 = vector.load %arg6[%c1_47, %c0_48, %c0_49] : memref<2x32x32xbf16, #tpu.memory_space<vmem>>, vector<1x32x32xbf16>
    %67 = vector.shape_cast %66 : vector<1x32x32xbf16> to vector<32x32xbf16>
    %cst_50 = arith.constant dense<0.000000e+00> : vector<16x32xf32>
    %68 = tpu.matmul %65, %67, %cst_50 {dimension_numbers = #tpu.dot_dimension_numbers<[1], [0], [0], [1], [0, 0, 1, 1], [], []>} : vector<16x32xbf16>, vector<32x32xbf16>, vector<16x32xf32> -> vector<16x32xf32>
    %69 = arith.addf %42, %68 : vector<16x32xf32>
    %c0_51 = arith.constant 0 : index
    %c0_52 = arith.constant 0 : index
    %70 = vector.load %arg14[%c0_51, %c0_52] : memref<16x32xf32, #tpu.memory_space<vmem>>, vector<16x32xf32>
    tpu.vector_store %arg14[%c0_51, %c0_52], %69 {strides = array<i32>} : memref<16x32xf32, #tpu.memory_space<vmem>>, vector<16x32xf32>,
    %c0_53 = arith.constant 0 : index
    %c0_54 = arith.constant 0 : index
    %71 = vector.load %arg13[%c0_53, %c0_54] : memref<16x8xf32, #tpu.memory_space<vmem>>, vector<16x8xf32>
    %72 = arith.truncf %69 : vector<16x32xf32> to vector<16x32xbf16>
    %c1_55 = arith.constant 1 : index
    %c0_56 = arith.constant 0 : index
    %c0_57 = arith.constant 0 : index
    %73 = vector.load %arg7[%c1_55, %c0_56, %c0_57] : memref<2x32x8xbf16, #tpu.memory_space<vmem>>, vector<1x32x8xbf16>
    %74 = vector.shape_cast %73 : vector<1x32x8xbf16> to vector<32x8xbf16>
    %cst_58 = arith.constant dense<0.000000e+00> : vector<16x8xf32>
    %75 = tpu.matmul %72, %74, %cst_58 {dimension_numbers = #tpu.dot_dimension_numbers<[1], [0], [0], [1], [0, 0, 1, 1], [], []>} : vector<16x32xbf16>, vector<32x8xbf16>, vector<16x8xf32> -> vector<16x8xf32>
    %76 = arith.addf %71, %75 : vector<16x8xf32>
    %c0_59 = arith.constant 0 : index
    %c0_60 = arith.constant 0 : index
    %77 = vector.load %arg13[%c0_59, %c0_60] : memref<16x8xf32, #tpu.memory_space<vmem>>, vector<16x8xf32>
    tpu.vector_store %arg13[%c0_59, %c0_60], %76 {strides = array<i32>} : memref<16x8xf32, #tpu.memory_space<vmem>>, vector<16x8xf32>,
    %c0_61 = arith.constant 0 : index
    %c0_62 = arith.constant 0 : index
    %78 = vector.load %arg14[%c0_61, %c0_62] : memref<16x32xf32, #tpu.memory_space<vmem>>, vector<16x32xf32>
    %cst_63 = arith.constant dense<0.000000e+00> : vector<16xf32>
    %79 = vector.multi_reduction <add>, %78, %cst_63 [1] : vector<16x32xf32> to vector<16xf32>
    %80 = vector.shape_cast %79 : vector<16xf32> to vector<16x1xf32>
    %cst_64 = arith.constant 3.200000e+01 : f32
    %81 = vector.broadcast %cst_64 : f32 to vector<16x1xf32>
    %82 = arith.divf %80, %81 : vector<16x1xf32>
    %83 = vector.broadcast %82 : vector<16x1xf32> to vector<16x32xf32>
    %84 = arith.subf %78, %83 : vector<16x32xf32>
    %85 = arith.mulf %84, %84 : vector<16x32xf32>
    %cst_65 = arith.constant dense<0.000000e+00> : vector<16xf32>
    %86 = vector.multi_reduction <add>, %85, %cst_65 [1] : vector<16x32xf32> to vector<16xf32>
    %87 = vector.shape_cast %86 : vector<16xf32> to vector<16x1xf32>
    %cst_66 = arith.constant 3.200000e+01 : f32
    %88 = vector.broadcast %cst_66 : f32 to vector<16x1xf32>
    %89 = arith.divf %87, %88 : vector<16x1xf32>
    %cst_67 = arith.constant 9.99999974E-6 : f32
    %90 = vector.broadcast %cst_67 : f32 to vector<16x1xf32>
    %91 = arith.addf %89, %90 : vector<16x1xf32>
    %92 = math.rsqrt %91 : vector<16x1xf32>
    %93 = vector.broadcast %92 : vector<16x1xf32> to vector<16x32xf32>
    %94 = arith.mulf %84, %93 : vector<16x32xf32>
    %c0_68 = arith.constant 0 : index
    %c0_69 = arith.constant 0 : index
    %95 = vector.load %arg8[%c0_68, %c0_69] : memref<1x32xf32, #tpu.memory_space<vmem>>, vector<1x32xf32>
    %96 = vector.broadcast %95 : vector<1x32xf32> to vector<16x32xf32>
    %97 = arith.mulf %94, %96 : vector<16x32xf32>
    %c0_70 = arith.constant 0 : index
    %c0_71 = arith.constant 0 : index
    %98 = vector.load %arg9[%c0_70, %c0_71] : memref<1x32xf32, #tpu.memory_space<vmem>>, vector<1x32xf32>
    %99 = vector.broadcast %98 : vector<1x32xf32> to vector<16x32xf32>
    %100 = arith.addf %97, %99 : vector<16x32xf32>
    %101 = arith.truncf %100 : vector<16x32xf32> to vector<16x32xbf16>
    %c0_72 = arith.constant 0 : index
    %c0_73 = arith.constant 0 : index
    %102 = vector.load %arg10[%c0_72, %c0_73] : memref<32x8xbf16, #tpu.memory_space<vmem>>, vector<32x8xbf16>
    %cst_74 = arith.constant dense<0.000000e+00> : vector<16x8xf32>
    %103 = tpu.matmul %101, %102, %cst_74 {dimension_numbers = #tpu.dot_dimension_numbers<[1], [0], [0], [1], [0, 0, 1, 1], [], []>} : vector<16x32xbf16>, vector<32x8xbf16>, vector<16x8xf32> -> vector<16x8xf32>
    %c0_75 = arith.constant 0 : index
    %c0_76 = arith.constant 0 : index
    %104 = vector.load %arg11[%c0_75, %c0_76] : memref<1x8xf32, #tpu.memory_space<vmem>>, vector<1x8xf32>
    %105 = vector.broadcast %104 : vector<1x8xf32> to vector<16x8xf32>
    %106 = arith.addf %103, %105 : vector<16x8xf32>
    %c0_77 = arith.constant 0 : index
    %c0_78 = arith.constant 0 : index
    %107 = vector.load %arg12[%c0_77, %c0_78] : memref<16x8xf32, #tpu.memory_space<vmem>>, vector<16x8xf32>
    tpu.vector_store %arg12[%c0_77, %c0_78], %106 {strides = array<i32>} : memref<16x8xf32, #tpu.memory_space<vmem>>, vector<16x8xf32>,
    return
  }
  func.func @transform_0(%arg0: i32) -> (i32, i32) {
    %c0_i32 = arith.constant 0 : i32
    %c0_i32_0 = arith.constant 0 : i32
    return %arg0, %c0_i32 : i32, i32
  }
  func.func @transform_1(%arg0: i32) -> (i32, i32) {
    %c0_i32 = arith.constant 0 : i32
    %c0_i32_0 = arith.constant 0 : i32
    return %arg0, %c0_i32 : i32, i32
  }
  func.func @transform_2(%arg0: i32) -> (i32, i32) {
    %c0_i32 = arith.constant 0 : i32
    %c0_i32_0 = arith.constant 0 : i32
    return %arg0, %c0_i32 : i32, i32
  }
  func.func @transform_3(%arg0: i32) -> (i32, i32, i32) {
    %c0_i32 = arith.constant 0 : i32
    %c0_i32_0 = arith.constant 0 : i32
    %c0_i32_1 = arith.constant 0 : i32
    %c0_i32_2 = arith.constant 0 : i32
    return %c0_i32, %c0_i32_0, %c0_i32_1 : i32, i32, i32
  }
  func.func @transform_4(%arg0: i32) -> (i32, i32, i32) {
    %c0_i32 = arith.constant 0 : i32
    %c0_i32_0 = arith.constant 0 : i32
    %c0_i32_1 = arith.constant 0 : i32
    %c0_i32_2 = arith.constant 0 : i32
    return %c0_i32, %c0_i32_0, %c0_i32_1 : i32, i32, i32
  }
  func.func @transform_5(%arg0: i32) -> (i32, i32, i32) {
    %c0_i32 = arith.constant 0 : i32
    %c0_i32_0 = arith.constant 0 : i32
    %c0_i32_1 = arith.constant 0 : i32
    %c0_i32_2 = arith.constant 0 : i32
    return %c0_i32, %c0_i32_0, %c0_i32_1 : i32, i32, i32
  }
  func.func @transform_6(%arg0: i32) -> (i32, i32, i32) {
    %c0_i32 = arith.constant 0 : i32
    %c0_i32_0 = arith.constant 0 : i32
    %c0_i32_1 = arith.constant 0 : i32
    %c0_i32_2 = arith.constant 0 : i32
    return %c0_i32, %c0_i32_0, %c0_i32_1 : i32, i32, i32
  }
  func.func @transform_7(%arg0: i32) -> (i32, i32) {
    %c0_i32 = arith.constant 0 : i32
    %c0_i32_0 = arith.constant 0 : i32
    %c0_i32_1 = arith.constant 0 : i32
    return %c0_i32, %c0_i32_0 : i32, i32
  }
  func.func @transform_8(%arg0: i32) -> (i32, i32) {
    %c0_i32 = arith.constant 0 : i32
    %c0_i32_0 = arith.constant 0 : i32
    %c0_i32_1 = arith.constant 0 : i32
    return %c0_i32, %c0_i32_0 : i32, i32
  }
  func.func @transform_9(%arg0: i32) -> (i32, i32) {
    %c0_i32 = arith.constant 0 : i32
    %c0_i32_0 = arith.constant 0 : i32
    %c0_i32_1 = arith.constant 0 : i32
    return %c0_i32, %c0_i32_0 : i32, i32
  }
  func.func @transform_10(%arg0: i32) -> (i32, i32) {
    %c0_i32 = arith.constant 0 : i32
    %c0_i32_0 = arith.constant 0 : i32
    %c0_i32_1 = arith.constant 0 : i32
    return %c0_i32, %c0_i32_0 : i32, i32
  }
  func.func @transform_11(%arg0: i32) -> (i32, i32) {
    %c0_i32 = arith.constant 0 : i32
    %c0_i32_0 = arith.constant 0 : i32
    return %arg0, %c0_i32 : i32, i32
  }
  func.func @transform_12(%arg0: i32) -> (i32, i32) {
    %c0_i32 = arith.constant 0 : i32
    %c0_i32_0 = arith.constant 0 : i32
    return %arg0, %c0_i32 : i32, i32
  }
}

</mosaic_0001>

<bundles_post_ra>
// kernel: tpu_custom_call.1
= control target key start
LH: loop header
LB: loop body
LE: loop exit
PB: predicated region body
PF: predicated region fallthrough
CT: control target
= control target key end

     0   :  { %s1484_s21 = smov 0   ;;  %s1667_s0 = inlined_call_operand.vmem [shape: bf16[32,32], index: 0, kind: input, shape index: {}]   ;;  %s1668_s1 = inlined_call_operand.vmem [shape: bf16[32,32], index: 1, kind: input, shape index: {}]   ;;  %s1669_s2 = inlined_call_operand.vmem [shape: f32[32,8], index: 2, kind: input, shape index: {}, may-alias: {2,12}]   ;;  %s1670_s3 = inlined_call_operand.vmem [shape: bf16[2,64,32], index: 3, kind: input, shape index: {}]   ;;  %s1671_s4 = inlined_call_operand.vmem [shape: f32[2,1,32], index: 4, kind: input, shape index: {}]   ;;  %s1672_s5 = inlined_call_operand.vmem [shape: bf16[2,32,32], index: 5, kind: input, shape index: {}]   ;;  %s1673_s6 = inlined_call_operand.vmem [shape: bf16[2,32,8], index: 6, kind: input, shape index: {}]   ;;  %s1674_s7 = inlined_call_operand.vmem [shape: f32[1,32], index: 7, kind: input, shape index: {}]   ;;  %s1675_s8 = inlined_call_operand.vmem [shape: f32[1,32], index: 8, kind: input, shape index: {}]   ;;  %s1676_s9 = inlined_call_operand.vmem [shape: bf16[32,8], index: 9, kind: input, shape index: {}]   ;;  %s1677_s10 = inlined_call_operand.vmem [shape: f32[1,8], index: 10, kind: input, shape index: {}]   ;;  %s1678_s11 = inlined_call_operand.vmem [shape: f32[32,8], index: 11, kind: output, shape index: {0}]   ;;  %s1679_s12 = inlined_call_operand.vmem [shape: f32[32,8], index: 12, kind: output, shape index: {1}, may-alias: {2,12}]  }
   0x1 LB: > { %s1208_s22 = sadd.s32 4294967295, %s1414_s21   ;;  %p1212_p0 = scmp.ge.s32.totalorder %s1414_s21, 1  ;;  %s1414_s21 = sphi %s1484_s21, %s23_s21  }
   0x2   : > { %p388_p1 = scmp.lt.s32.totalorder %s1414_s21, 3 }
   0x4   : > { %p389_p2 = pnand %p1212_p0, %p388_p1 }
   0x5   : > { %s1213_s23 = sshll.u32 (!%p389_p2), %s1208_s22, 1  ;;  %v1377_v0 = vld [vmem:[%s1670_s3] sm:$0xff] (!%p389_p2)   ;;  %v1416_v1 = vmov (!%p389_p2), 0.0   ;;  %v1378_v2 = vld [vmem:[%s1670_s3 + $0x8] sm:$0xff] (!%p389_p2)   ;;  %vm487_vm0 = vcmask (!%p389_p2), 64512   ;;  %v1379_v3 = vld [vmem:[%s1670_s3 + $0x10] sm:$0xff] (!%p389_p2)  }
   0x6   : > { %392 = sbr.rel (%p389_p2) target bundleno = 1608 (0x648), region = 64  ;;  %p446_p3 = scmp.lt.s32.totalorder (!%p389_p2), %s1213_s23, 3  ;;  %1302 = vmatprep.subr.bf16.mxu0 (!%p389_p2), %v1416_v1  ;;  %1314 = vmatprep.subr.bf16.mxu1 (!%p389_p2), %v1416_v1  ;;  %vm1417_vm1 = vmmov (!%p389_p2), 0   ;;  %vm482_vm2 = vcmask (!%p389_p2), 261120   ;;  %v1380_v8 = vld [vmem:[%s1670_s3 + $0x18] sm:$0xff] (!%p389_p2)   ;;  %vm542_vm3 = vcmask (!%p389_p2), 523264  }
   0x7   : > { %1303 = vmatpush3.bf16.msra.mxu0 (!%p389_p2), %v1377_v0  ;;  %1310 = vmatprep.mubr.msk.bf16.mxu0 (!%p389_p2), %vm1417_vm1, %v1416_v1  ;;  %s1418_s13 = smov (!%p389_p2), 32   ;;  %v1381_v16 = vld [vmem:[%s1672_s5] sm:$0xff] (!%p389_p2)   ;;  %v1382_v17 = vld [vmem:[%s1672_s5 + $0x8] sm:$0xff] (!%p389_p2)   ;;  %v1387_v48 = vld [vmem:[%s1670_s3 + $0x30] sm:$0xff] (!%p389_p2)  }
   0x8   : > { %1304 = vmatprep.subr.bf16.mxu0 (!%p389_p2), %v1416_v1  ;;  %1318 = vmatprep.mubr.msk.bf16.mxu1 (!%p389_p2), %vm1417_vm1, %v1416_v1  ;;  %v1224_v18 = vld [vmem:[%s1671_s4] ss:$0 sm:$0xff] (!%p389_p2)  ;;  %v1385_v46 = vld [vmem:[%s1673_s6 + $0x8] sm:$0xff] (!%p389_p2)   ;;  %v1388_v49 = vld [vmem:[%s1670_s3 + $0x38] sm:$0xff] (!%p389_p2)  }
   0x9   : > { %1315 = vmatpush3.bf16.msra.mxu1 (!%p389_p2), %v1381_v16  ;;  %v1383_v44 = vld [vmem:[%s1673_s6] sm:$0xff] (!%p389_p2)   ;;  %v1386_v47 = vld [vmem:[%s1670_s3 + $0x28] sm:$0xff] (!%p389_p2)   ;;  %v1389_v61 = vld [vmem:[%s1672_s5 + $0x10] sm:$0xff] (!%p389_p2)  }
   0xa   : > { %1316 = vmatprep.subr.bf16.mxu1 (!%p389_p2), %v1416_v1  ;;  %v1384_v45 = vld [vmem:[%s1670_s3 + $0x20] sm:$0xff] (!%p389_p2)   ;;  %v1390_v62 = vld [vmem:[%s1672_s5 + $0x18] sm:$0xff] (!%p389_p2)  }
   0xb   : > { %1305 = vmatpush3.bf16.msra.mxu0 (!%p389_p2), %v1378_v2 }
   0xc   : > { %1306 = vmatprep.subr.bf16.mxu0 (!%p389_p2), %v1416_v1 }
   0xd   : > { %s1681_s23 = smov (!%p446_p3, %s1213_s23), 3  ;;  %1317 = vmatpush3.bf16.msra.mxu1 %v1382_v17 }
   0xe   : > { %s1214_s28 = sshll.u32 %s1681_s23, 2  ;;  %s1501_s29 = sshll.u32 %s1681_s23, 3  ;;  %1322 = vmatprep.subr.bf16.mxu1 %v1416_v1 }
   0xf   : > { %s455_s16 = scalar_lea.vmem %s1668_s1, %s1214_s28  ;;  %s461_s19 = scalar_lea.vmem %s1669_s2, %s1501_s29  ;;  %1307 = vmatpush3.bf16.msra.mxu0 %v1379_v3 }
  0x10   : > { %s1521_s23 = scalar_lea.vmem %s1679_s12, %s1501_s29  ;;  %v476_v4 = vld [vmem:[%s455_s16] sm:$0xff]   ;;  %v486_v6 = vld [vmem:[%s461_s19 + $0x8] sm:$0xff]  ;;  %s449_s26 = scalar_lea.vmem %s1667_s0, %s1214_s28  ;;  %1308 = vmatprep.subr.bf16.mxu0 %v1416_v1 }
  0x11   : > { %v485_v5 = vld [vmem:[%s461_s19] sm:$0xff]  ;;  %498 = vrot.lane.b32.xlu0 %v476_v4, %s1418_s13  ;;  %s467_s24 = scalar_lea.vmem %s1678_s11, %s1501_s29 }
  0x12   : > { %488 = vst.msk [vmem:[%s1521_s23] sm:$0xff] %vm487_vm0, %v485_v5  ;;  %v1274_v7 = vld [vmem:[%s449_s26] sm:$0xff]   ;;  %489 = vst.msk [vmem:[%s1521_s23 + $0x8] sm:$0xff] %vm487_vm0, %v486_v6 }
  0x13   : > { %v1275_v9 = vunpack.c.l.bf16 %v1274_v7  ;;  %v1276_v10 = vunpack.c.h.bf16 %v1274_v7  ;;  %1309 = vmatpush3.bf16.msra.mxu0 %v1380_v8  ;;  %v1245_v8 = vld [vmem:[%s1671_s4 + $0x1] ss:$0 sm:$0xff] }
  0x14   : > { %1330 = vmatprep.subr.bf16.mxu0 %v1416_v1 }
  0x15   : > { %483 = vst.msk [vmem:[#allocation2] sm:$0xff] %vm482_vm2, %v1275_v9  ;;  %484 = vst.msk [vmem:[#allocation2 + $0x8] sm:$0xff] %vm482_vm2, %v1276_v10 }
  0x19   : > { %v669_v63 = vld [vmem:[%s1521_s23] sm:$0xff]  ;;  %v670_v2 = vld [vmem:[%s1521_s23 + $0x8] sm:$0xff] }
  0x1c   : > { %v1538_v11 = vld [vmem:[#allocation2] sm:$0xff]  ;;  %v1540_v12 = vld [vmem:[#allocation2 + $0x8] sm:$0xff] }
  0x1d   : > { %v492_v13 = vpack.c.bf16 %v1540_v12, %v1538_v11 }
  0x83   : > { %v1544_v14 = vpop.permute.xlu0 %498 }
  0x84   : > { %v502_v15 = vsel %vm482_vm2, %v492_v13, %v1544_v14 }
  0x85   : > { %1311 = vmatmul.mubr.msk.bf16.vlgmr.msra.gmra.mrb[0].mxu0 %vm542_vm3, %v502_v15 }
  0x86   : > { %1338 = vmatprep.mubr.msk.bf16.mxu0 %vm1417_vm1, %v1416_v1  ;;  %1331 = vmatpush3.bf16.msra.mxu0 %v1384_v45 }
  0x87   : > { %1332 = vmatprep.subr.bf16.mxu0 %v1416_v1 }
  0x8a   : > { %1333 = vmatpush3.bf16.msra.mxu0 %v1386_v47 }
  0x8b   : > { %1334 = vmatprep.subr.bf16.mxu0 %v1416_v1 }
  0x8e   : > { %1335 = vmatpush3.bf16.msra.mxu0 %v1387_v48 }
  0x8f   : > { %1336 = vmatprep.subr.bf16.mxu0 %v1416_v1 }
  0x92   : > { %1337 = vmatpush3.bf16.msra.mxu0 %v1388_v49 }
  0x93   : > { %1358 = vmatprep.subr.bf16.mxu0 %v1416_v1 }
 0x158   : > { %v579_v19 = vpop.f32.mrb[0].mxu0 }
 0x159   : > { %v580_v20 = vadd.f32 %v1224_v18, %v579_v19  ;;  %v1312_v21 = vpop.f32.mrb[1].mxu0 }
 0x15a   : > { %v582_v22 = vpop.f32.mrb[2].mxu0 }
 0x15b   : > { %v586_v23 = vmul.f32 %v580_v20, %v580_v20  ;;  %v583_v24 = vadd.f32 %v1224_v18, %v582_v22  ;;  %v1313_v25 = vpop.f32.mrb[3].mxu0 }
 0x15d   : > { %v588_v26 = vmul.f32 %v586_v23, %v580_v20  ;;  %v587_v27 = vmul.f32 %v583_v24, %v583_v24 }
 0x15f   : > { %v590_v28 = vmul.f32 0.044715, %v588_v26  ;;  %v589_v29 = vmul.f32 %v587_v27, %v583_v24 }
 0x161   : > { %v592_v30 = vadd.f32 %v590_v28, %v580_v20  ;;  %v591_v31 = vmul.f32 0.044715, %v589_v29 }
 0x163   : > { %v594_v32 = vmul.f32 0.7978846, %v592_v30  ;;  %v593_v33 = vadd.f32 %v591_v31, %v583_v24 }
 0x165   : > { %1396 = vtanh.f32 %v594_v32  ;;  %v595_v34 = vmul.f32 0.7978846, %v593_v33 }
 0x167   : > { %1398 = vtanh.f32 %v595_v34  ;;  %v1391_v34 = vld [vmem:[%s1673_s6 + $0x10] sm:$0xff]  }
 0x16f   : > { %v1397_v35 = vpop.eup %1396 }
 0x170   : > { %v598_v36 = vadd.f32 1.0, %v1397_v35  ;;  %v1392_v35 = vld [vmem:[%s1673_s6 + $0x18] sm:$0xff]  }
 0x171   : > { %v1399_v37 = vpop.eup %1398 }
 0x172   : > { %v600_v38 = vmul.f32 0.5, %v598_v36  ;;  %v599_v39 = vadd.f32 1.0, %v1399_v37 }
 0x174   : > { %v601_v40 = vmul.f32 0.5, %v599_v39  ;;  %v602_v41 = vmul.f32 %v600_v38, %v580_v20 }
 0x176   : > { %v603_v42 = vmul.f32 %v601_v40, %v583_v24 }
 0x178   : > { %v604_v43 = vpack.c.bf16 %v603_v42, %v602_v41 }
 0x17a   : > { %1319 = vmatmul.mubr.msk.bf16.vlgmr.msra.gmra.mrb[0].mxu1 %vm482_vm2, %v604_v43 }
 0x17b   : > { %1326 = vmatprep.mubr.msk.bf16.mxu1 %vm1417_vm1, %v1416_v1  ;;  %1323 = vmatpush3.bf16.msra.mxu1 %v1383_v44 }
 0x17c   : > { %1324 = vmatprep.subr.bf16.mxu1 %v1416_v1 }
 0x17f   : > { %1325 = vmatpush3.bf16.msra.mxu1 %v1385_v46 }
 0x180   : > { %1342 = vmatprep.subr.bf16.mxu1 %v1416_v1 }
 0x24d   : > { %v658_v50 = vpop.f32.mrb[0].mxu1 }
 0x24e   : > { %v665_v51 = vadd.f32 %v658_v50, %v1538_v11  ;;  %v1320_v52 = vpop.f32.mrb[1].mxu1 }
 0x24f   : > { %v661_v53 = vpop.f32.mrb[2].mxu1 }
 0x250   : > { %667 = vst.msk [vmem:[#allocation2] sm:$0xff] %vm482_vm2, %v665_v51  ;;  %v666_v54 = vadd.f32 %v661_v53, %v1540_v12  ;;  %v1321_v55 = vpop.f32.mrb[3].mxu1 }
 0x252   : > { %668 = vst.msk [vmem:[#allocation2 + $0x8] sm:$0xff] %vm482_vm2, %v666_v54  ;;  %v671_v56 = vpack.c.bf16 %v666_v54, %v665_v51 }
 0x254   : > { %1327 = vmatmul.mubr.msk.bf16.vlgmr.msra.gmra.mrb[4].mxu1 %vm482_vm2, %v671_v56 }
 0x255   : > { %1346 = vmatprep.mubr.msk.bf16.mxu1 %vm1417_vm1, %v1416_v1  ;;  %1343 = vmatpush3.bf16.msra.mxu1 %v1389_v61 }
 0x256   : > { %1344 = vmatprep.subr.bf16.mxu1 %v1416_v1 }
 0x257   : > { %v736_v57 = vld [vmem:[#allocation2] sm:$0xff] }
 0x259   : > { %v737_v58 = vld [vmem:[#allocation2 + $0x8] sm:$0xff]  ;;  %1345 = vmatpush3.bf16.msra.mxu1 %v1390_v62 }
 0x25a   : > { %v738_v59 = vpack.c.bf16 %v737_v58, %v736_v57  ;;  %1350 = vmatprep.subr.bf16.mxu1 %v1416_v1 }
 0x25c   : > { %v740_v60 = vsel %vm482_vm2, %v738_v59, %v1544_v14 }
 0x25d   : > { %1339 = vmatmul.mubr.msk.bf16.vlgmr.msra.gmra.mrb[4].mxu0 %vm542_vm3, %v740_v60 }
 0x25e   : > { %1362 = vmatprep.mubr.msk.bf16.mxu0 %vm1417_vm1, %v1416_v1 }
 0x327   : > { %v725_v0 = vpop.f32.mrb[4].mxu1 }
 0x328   : > { %v732_v3 = vadd.f32 %v725_v0, %v669_v63  ;;  %v1328_v4 = vpop.f32.mrb[5].mxu1 }
 0x329   : > { %v728_v5 = vpop.f32.mrb[6].mxu1 }
 0x32a   : > { %v733_v6 = vadd.f32 %v728_v5, %v670_v2  ;;  %734 = vst.msk [vmem:[%s1521_s23] sm:$0xff] %vm487_vm0, %v732_v3  ;;  %v1329_v7 = vpop.f32.mrb[7].mxu1 }
 0x32c   : > { %735 = vst.msk [vmem:[%s1521_s23 + $0x8] sm:$0xff] %vm487_vm0, %v733_v6 }
 0x330   : > { %v818_v9 = vpop.f32.mrb[4].mxu0 }
 0x331   : > { %v819_v10 = vadd.f32 %v1245_v8, %v818_v9  ;;  %v1340_v11 = vpop.f32.mrb[5].mxu0  ;;  %v909_v59 = vld [vmem:[%s1521_s23] sm:$0xff] }
 0x332   : > { %v821_v12 = vpop.f32.mrb[6].mxu0  ;;  %v1265_v11 = vld [vmem:[%s1674_s7] ss:$0 sm:$0xff] }
 0x333   : > { %v825_v13 = vmul.f32 %v819_v10, %v819_v10  ;;  %v822_v14 = vadd.f32 %v1245_v8, %v821_v12  ;;  %v1341_v15 = vpop.f32.mrb[7].mxu0  ;;  %v910_v63 = vld [vmem:[%s1521_s23 + $0x8] sm:$0xff] }
 0x334   : > { %v1266_v15 = vld [vmem:[%s1675_s8] ss:$0 sm:$0xff] }
 0x335   : > { %v827_v16 = vmul.f32 %v825_v13, %v819_v10  ;;  %v826_v17 = vmul.f32 %v822_v14, %v822_v14 }
 0x337   : > { %v829_v18 = vmul.f32 0.044715, %v827_v16  ;;  %v828_v19 = vmul.f32 %v826_v17, %v822_v14 }
 0x339   : > { %v831_v20 = vadd.f32 %v829_v18, %v819_v10  ;;  %v830_v21 = vmul.f32 0.044715, %v828_v19 }
 0x33b   : > { %v833_v22 = vmul.f32 0.7978846, %v831_v20  ;;  %v832_v23 = vadd.f32 %v830_v21, %v822_v14  ;;  %v1267_v20 = vld [vmem:[%s1677_s10] ss:$0 sm:$0xff] }
 0x33d   : > { %1400 = vtanh.f32 %v833_v22  ;;  %v834_v24 = vmul.f32 0.7978846, %v832_v23 }
 0x33f   : > { %1402 = vtanh.f32 %v834_v24 }
 0x347   : > { %v1401_v25 = vpop.eup %1400 }
 0x348   : > { %v837_v26 = vadd.f32 1.0, %v1401_v25 }
 0x349   : > { %v1403_v27 = vpop.eup %1402 }
 0x34a   : > { %v839_v28 = vmul.f32 0.5, %v837_v26  ;;  %v838_v29 = vadd.f32 1.0, %v1403_v27 }
 0x34c   : > { %v840_v30 = vmul.f32 0.5, %v838_v29  ;;  %v841_v31 = vmul.f32 %v839_v28, %v819_v10 }
 0x34e   : > { %v842_v32 = vmul.f32 %v840_v30, %v822_v14 }
 0x350   : > { %v843_v33 = vpack.c.bf16 %v842_v32, %v841_v31 }
 0x352   : > { %1347 = vmatmul.mubr.msk.bf16.vlgmr.msra.gmra.mrb[8].mxu1 %vm482_vm2, %v843_v33 }
 0x353   : > { %1354 = vmatprep.mubr.msk.bf16.mxu1 %vm1417_vm1, %v1416_v1  ;;  %1351 = vmatpush3.bf16.msra.mxu1 %v1391_v34 }
 0x354   : > { %1352 = vmatprep.subr.bf16.mxu1 %v1416_v1 }
 0x357   : > { %1353 = vmatpush3.bf16.msra.mxu1 %v1392_v35 }
 0x425   : > { %v898_v36 = vpop.f32.mrb[8].mxu1 }
 0x426   : > { %v905_v37 = vadd.f32 %v898_v36, %v736_v57  ;;  %v1348_v38 = vpop.f32.mrb[9].mxu1  ;;  %v1393_v57 = vld [vmem:[%s1676_s9] sm:$0xff]  }
 0x427   : > { %v901_v39 = vpop.f32.mrb[10].mxu1  ;;  %1359 = vmatpush3.bf16.msra.mxu0 %v1393_v57 }
 0x428   : > { %907 = vst.msk [vmem:[#allocation2] sm:$0xff] %vm482_vm2, %v905_v37  ;;  %v906_v40 = vadd.f32 %v901_v39, %v737_v58  ;;  %v1349_v41 = vpop.f32.mrb[11].mxu1  ;;  %1360 = vmatprep.subr.bf16.mxu0 %v1416_v1  ;;  %v1394_v58 = vld [vmem:[%s1676_s9 + $0x8] sm:$0xff]  }
 0x42a   : > { %908 = vst.msk [vmem:[#allocation2 + $0x8] sm:$0xff] %vm482_vm2, %v906_v40  ;;  %v911_v42 = vpack.c.bf16 %v906_v40, %v905_v37 }
 0x42b   : > { %1361 = vmatpush3.bf16.msra.mxu0 %v1394_v58 }
 0x42c   : > { %1355 = vmatmul.mubr.msk.bf16.vlgmr.msra.gmra.mrb[12].mxu1 %vm482_vm2, %v911_v42 }
 0x42f   : > { %v977_v43 = vld [vmem:[#allocation2] sm:$0xff] }
 0x430   : > { %v979_v44 = vsel %vm482_vm2, %v977_v43, 0.0 }
 0x431   : > { %980 = vadd.xlane.f32.xlu0 %v979_v44  ;;  %v978_v45 = vld [vmem:[#allocation2 + $0x8] sm:$0xff] }
 0x432   : > { %v982_v46 = vsel %vm482_vm2, %v978_v45, 0.0 }
 0x433   : > { %983 = vadd.xlane.f32.xlu1 %v982_v46 }
 0x4be   : > { %v981_v47 = vpop.xlane.xlu0 %980 }
 0x4bf   : > { %v986_v48 = vmul.f32 0.03125, %v981_v47 }
 0x4c0   : > { %v984_v49 = vpop.xlane.xlu1 %983 }
 0x4c1   : > { %v988_v50 = vsub.f32 %v977_v43, %v986_v48  ;;  %v987_v51 = vmul.f32 0.03125, %v984_v49 }
 0x4c3   : > { %v989_v52 = vsub.f32 %v978_v45, %v987_v51  ;;  %v990_v53 = vmul.f32 %v988_v50, %v988_v50 }
 0x4c5   : > { %v992_v54 = vsel %vm482_vm2, %v990_v53, 0.0  ;;  %v991_v55 = vmul.f32 %v989_v52, %v989_v52 }
 0x4c6   : > { %993 = vadd.xlane.f32.xlu1 %v992_v54 }
 0x4c7   : > { %v995_v56 = vsel %vm482_vm2, %v991_v55, 0.0 }
 0x4ca   : > { %996 = vadd.xlane.f32.xlu1 %v995_v56 }
 0x4ff   : > { %v966_v60 = vpop.f32.mrb[12].mxu1 }
 0x500   : > { %v973_v61 = vadd.f32 %v966_v60, %v909_v59  ;;  %v1356_v62 = vpop.f32.mrb[13].mxu1 }
 0x501   : > { %v969_v0 = vpop.f32.mrb[14].mxu1 }
 0x502   : > { %v974_v2 = vadd.f32 %v969_v0, %v910_v63  ;;  %975 = vst.msk [vmem:[%s1521_s23] sm:$0xff] %vm487_vm0, %v973_v61  ;;  %v1357_v3 = vpop.f32.mrb[15].mxu1 }
 0x504   : > { %976 = vst.msk [vmem:[%s1521_s23 + $0x8] sm:$0xff] %vm487_vm0, %v974_v2 }
 0x553   : > { %v994_v4 = vpop.xlane.xlu1 %993 }
 0x554   : > { %v998_v5 = vmul.f32 0.03125, %v994_v4 }
 0x556   : > { %v1000_v1 = vadd.f32 1e-05, %v998_v5 }
 0x557   : > { %v997_v6 = vpop.xlane.xlu1 %996 }
 0x558   : > { %1404 = vrsqrt.f32 %v1000_v1  ;;  %v999_v7 = vmul.f32 0.03125, %v997_v6 }
 0x55a   : > { %v1001_v8 = vadd.f32 1e-05, %v999_v7 }
 0x55c   : > { %1406 = vrsqrt.f32 %v1001_v8 }
 0x562   : > { %v1405_v9 = vpop.eup %1404 }
 0x563   : > { %v1004_v10 = vmul.f32 %v1405_v9, %v988_v50 }
 0x565   : > { %v1013_v13 = vmul.f32 %v1265_v11, %v1004_v10 }
 0x566   : > { %v1407_v12 = vpop.eup %1406 }
 0x567   : > { %v1005_v14 = vmul.f32 %v1407_v12, %v989_v52  ;;  %v1022_v17 = vadd.f32 %v1266_v15, %v1013_v13 }
 0x569   : > { %v1014_v16 = vmul.f32 %v1265_v11, %v1005_v14 }
 0x56b   : > { %v1023_v18 = vadd.f32 %v1266_v15, %v1014_v16 }
 0x56d   : > { %v1024_v19 = vpack.c.bf16 %v1023_v18, %v1022_v17 }
 0x56f   : > { %1363 = vmatmul.mubr.msk.bf16.vlgmr.msra.gmra.mrb[8].mxu0 %vm482_vm2, %v1024_v19 }
 0x642   : > { %v1085_v21 = vpop.f32.mrb[8].mxu0 }
 0x643   : > { %v1086_v22 = vadd.f32 %v1267_v20, %v1085_v21  ;;  %v1364_v23 = vpop.f32.mrb[9].mxu0 }
 0x644   : > { %v1088_v24 = vpop.f32.mrb[10].mxu0 }
 0x645   : > { %1092 = vst.msk [vmem:[%s467_s24] sm:$0xff] %vm487_vm0, %v1086_v22  ;;  %v1089_v25 = vadd.f32 %v1267_v20, %v1088_v24  ;;  %v1365_v26 = vpop.f32.mrb[11].mxu0 }
 0x647   : > { %1093 = vst.msk [vmem:[%s467_s24 + $0x8] sm:$0xff] %vm487_vm0, %v1089_v25 }
 0x648 PF: > { %s23_s21 = sadd.s32 1, %s1414_s21  }
 0x649   : > { %p20_p4 = scmp.ge.s32.totalorder %s23_s21, 4  }
 0x64b   :  { %22 = sbr.rel (!%p20_p4) target bundleno = 1 (0x1), region = 116 }

</bundles_post_ra>
